<compile_context>
chip_gen: v7x
topology: tpu7x:2x2x1
jax: 0.10.0
libtpu: 0.0.40
codegen_flags: <defaults>
</compile_context>

<pallas_src>
import functools
import math

import jax
import jax.numpy as jnp
from jax.experimental import pallas as pl
from jax.experimental.pallas import tpu as pltpu

F_IN = 12
F_OUT = 12
F_PAD = 128  # lane-dense padded output width (one full vreg lane dimension)


def _schepsn_kernel(x_ref, w_ref, b_ref, o_ref):
    # Hot path, all in VMEM: in-kernel cast -> MXU matmul -> bias add + ReLU (VPU).
    x = x_ref[...].astype(jnp.float32)   # (TM, 12), cast from native dtype here
    w = w_ref[...]                       # (12, 128) f32, zero-padded cols 12..127
    b = b_ref[...]                       # (1, 128)  f32, zero-padded
    y = jnp.dot(x, w, preferred_element_type=jnp.float32) + b
    o_ref[...] = jnp.maximum(y, 0.0)     # (TM, 128) f32, lane-dense store


def prepare_params(weight, bias):
    """Pad nn.Linear params (out,in)/(out,) to the lane-dense kernel layout, once."""
    w_t = weight.astype(jnp.float32).T   # (in, out) so the kernel needs no transpose
    w_pad = jnp.zeros((F_IN, F_PAD), jnp.float32).at[:, :F_OUT].set(w_t)
    b_pad = jnp.zeros((1, F_PAD), jnp.float32).at[:, :F_OUT].set(
        bias.astype(jnp.float32))
    return w_pad, b_pad


@functools.partial(jax.jit, static_argnames=("tile_m",))
def schepsn_forward(x, w_pad, b_pad, *, tile_m=1024):
    """relu(x @ W^T + b) in float32. x: (B, 12), any float dtype."""
    B = x.shape[0]
    # Sublane-dense batch tile, capped so tiny batches don't over-allocate.
    # Per-step VMEM (TM=1024, f32): ~24 KiB in + 512 KiB out, double-buffered
    # -> ~1 MiB, well under the v7x 32 MiB scoped default.
    tm = max(8, min(tile_m, ((B + 7) // 8) * 8))
    grid = (pl.cdiv(B, tm),)

    cost = pl.CostEstimate(
        flops=2 * B * F_IN * F_OUT,
        transcendentals=0,
        bytes_accessed=(B * F_IN * jnp.dtype(x.dtype).itemsize   # x read
                        + B * F_PAD * 4                          # padded out write
                        + F_IN * F_PAD * 4 + F_PAD * 4),         # weight + bias
    )

    out_padded = pl.pallas_call(
        _schepsn_kernel,
        out_shape=jax.ShapeDtypeStruct((B, F_PAD), jnp.float32),
        grid=grid,
        in_specs=[
            # x: batch-tiled; last dim (12) equals the full array extent.
            pl.BlockSpec((tm, F_IN), lambda i: (i, 0)),
            # weight / bias: constant index_map -> stay VMEM-resident across steps.
            pl.BlockSpec((F_IN, F_PAD), lambda i: (0, 0)),
            pl.BlockSpec((1, F_PAD), lambda i: (0, 0)),
        ],
        out_specs=pl.BlockSpec((tm, F_PAD), lambda i: (i, 0)),
        compiler_params=pltpu.CompilerParams(
            # Independent batch tiles: lets Mosaic shard across v7x's 2 TCs.
            dimension_semantics=("parallel",),
        ),
        cost_estimate=cost,
    )(x, w_pad, b_pad)

    # Restore the module's (B, 12) output contract.
    return out_padded[:, :F_OUT]


def init_params(key, in_features=F_IN, out_features=F_OUT):
    """Params matching nn.Linear(12,12) with xavier_uniform_ weight."""
    k_w, k_b = jax.random.split(key)
    a = math.sqrt(6.0 / (in_features + out_features))  # xavier_uniform, gain=1
    weight = jax.random.uniform(
        k_w, (out_features, in_features), jnp.float32, minval=-a, maxval=a
    )
    bound = 1.0 / math.sqrt(in_features)  # nn.Linear default bias init
    bias = jax.random.uniform(
        k_b, (out_features,), jnp.float32, minval=-bound, maxval=bound
    )
    return weight, bias


if __name__ == "__main__":
    key = jax.random.PRNGKey(0)
    k_x, k_p = jax.random.split(key)

    # Small demo batch, matching the module's (B, 12) input.
    B = 8
    x = jax.random.normal(k_x, (B, F_IN), jnp.float32)

    weight, bias = init_params(k_p)
    w_pad, b_pad = prepare_params(weight, bias)

    out = jax.block_until_ready(schepsn_forward(x, w_pad, b_pad))

    ref = jnp.maximum(
        jnp.dot(x, weight.T, precision=jax.lax.Precision.HIGHEST) + bias, 0.0
    )
    assert out.shape == (B, F_OUT)
    assert jnp.allclose(out, ref, atol=1e-5, rtol=1e-5)

    # Exercise the tiled / partial-last-block / in-kernel-cast path with bf16 input.
    Bb = 2088  # 2 full 1024-row tiles + a 40-row partial tile
    xb = jax.random.normal(k_x, (Bb, F_IN), jnp.float32).astype(jnp.bfloat16)
    outb = jax.block_until_ready(schepsn_forward(xb, w_pad, b_pad))
    refb = jnp.maximum(
        jnp.dot(xb.astype(jnp.float32), weight.T,
                precision=jax.lax.Precision.HIGHEST) + bias, 0.0
    )
    assert outb.shape == (Bb, F_OUT)
    assert jnp.allclose(outb, refb, atol=1e-3, rtol=1e-3)

    # TODO(synk): the PyTorch `.cuda()` device move has no TPU-kernel equivalent;
    # only the `.float()` cast + Linear + ReLU semantics are implemented.
    print("KERNEL_OK")
</pallas_src>

<mosaic_0001>
module attributes {stable_mosaic.version = 11 : i64} {
  func.func @_schepsn_kernel(%arg0: i32, %arg1: memref<8x12xf32, #tpu.memory_space<vmem>>, %arg2: memref<12x128xf32, #tpu.memory_space<vmem>>, %arg3: memref<1x128xf32, #tpu.memory_space<vmem>>, %arg4: memref<8x128xf32, #tpu.memory_space<vmem>>) attributes {dimension_semantics = [#tpu.dimension_semantics<parallel>], iteration_bounds = array<i64: 1>, scalar_prefetch = 0 : i64, scratch_operands = 0 : i64, tpu.core_type = #tpu.core_type<tc>, window_params = [{transform_indices = @transform_0, window_bounds = array<i64: 8, 12>}, {pipeline_mode = #tpu.pipeline_mode<synchronous>, transform_indices = @transform_1, window_bounds = array<i64: 12, 128>}, {pipeline_mode = #tpu.pipeline_mode<synchronous>, transform_indices = @transform_2, window_bounds = array<i64: 1, 128>}, {transform_indices = @transform_3, window_bounds = array<i64: 8, 128>}]} {
    %c0 = arith.constant 0 : index
    %c0_0 = arith.constant 0 : index
    %0 = vector.load %arg1[%c0, %c0_0] : memref<8x12xf32, #tpu.memory_space<vmem>>, vector<8x12xf32>
    %c0_1 = arith.constant 0 : index
    %c0_2 = arith.constant 0 : index
    %1 = vector.load %arg2[%c0_1, %c0_2] : memref<12x128xf32, #tpu.memory_space<vmem>>, vector<12x128xf32>
    %c0_3 = arith.constant 0 : index
    %c0_4 = arith.constant 0 : index
    %2 = vector.load %arg3[%c0_3, %c0_4] : memref<1x128xf32, #tpu.memory_space<vmem>>, vector<1x128xf32>
    %cst = arith.constant dense<0.000000e+00> : vector<8x128xf32>
    %3 = tpu.matmul %0, %1, %cst {dimension_numbers = #tpu.dot_dimension_numbers<[1], [0], [0], [1], [0, 0, 1, 1], [], []>} : vector<8x12xf32>, vector<12x128xf32>, vector<8x128xf32> -> vector<8x128xf32>
    %4 = vector.broadcast %2 : vector<1x128xf32> to vector<8x128xf32>
    %5 = arith.addf %3, %4 : vector<8x128xf32>
    %cst_5 = arith.constant 0.000000e+00 : f32
    %6 = vector.broadcast %cst_5 : f32 to vector<8x128xf32>
    %7 = arith.maximumf %5, %6 : vector<8x128xf32>
    %c0_6 = arith.constant 0 : index
    %c0_7 = arith.constant 0 : index
    %8 = vector.load %arg4[%c0_6, %c0_7] : memref<8x128xf32, #tpu.memory_space<vmem>>, vector<8x128xf32>
    tpu.vector_store %arg4[%c0_6, %c0_7], %7 {strides = array<i32>} : memref<8x128xf32, #tpu.memory_space<vmem>>, vector<8x128xf32>,
    return
  }
  func.func @transform_0(%arg0: i32) -> (i32, i32) {
    %c0_i32 = arith.constant 0 : i32
    %c0_i32_0 = arith.constant 0 : i32
    return %arg0, %c0_i32 : i32, i32
  }
  func.func @transform_1(%arg0: i32) -> (i32, i32) {
    %c0_i32 = arith.constant 0 : i32
    %c0_i32_0 = arith.constant 0 : i32
    %c0_i32_1 = arith.constant 0 : i32
    return %c0_i32, %c0_i32_0 : i32, i32
  }
  func.func @transform_2(%arg0: i32) -> (i32, i32) {
    %c0_i32 = arith.constant 0 : i32
    %c0_i32_0 = arith.constant 0 : i32
    %c0_i32_1 = arith.constant 0 : i32
    return %c0_i32, %c0_i32_0 : i32, i32
  }
  func.func @transform_3(%arg0: i32) -> (i32, i32) {
    %c0_i32 = arith.constant 0 : i32
    %c0_i32_0 = arith.constant 0 : i32
    return %arg0, %c0_i32 : i32, i32
  }
}

</mosaic_0001>

<bundles_post_ra>
// kernel: schepsn_forward.1
= control target key start
LH: loop header
LB: loop body
LE: loop exit
PB: predicated region body
PF: predicated region fallthrough
CT: control target
= control target key end

     0   :  { %8 = vsyncpa [#allocation3], 0  ;;  %s320_s0 = inlined_call_operand.hbm [shape: f32[8,12], index: 0, kind: input, shape index: {}]   ;;  %s321_s1 = inlined_call_operand.hbm [shape: f32[12,128], index: 1, kind: input, shape index: {}]   ;;  %s322_s2 = inlined_call_operand.vmem [shape: f32[1,128], index: 2, kind: input, shape index: {}]   ;;  %s323_s3 = inlined_call_operand.hbm [shape: f32[8,128], index: 3, kind: output, shape index: {}]  }
   0x1   :  { %9 = vsyncpa [#allocation6], 0 }
   0x2   :  { %10 = vsyncpa [#allocation4], 0  ;;  %s245_s12 = smov [#allocation2]   ;;  %s246_s14 = smov [#allocation5]  }
   0x3   :  { %s17_s13 = sshll.u32 %s245_s12, 4  ;;  %s26_s15 = sshll.u32 %s246_s14, 4  ;;  %s18_s13 = int_to_ptr.vmem [resolvable:$true] %s17_s13  ;;  %s274_s15 = int_to_ptr.vmem [resolvable:$true] %s26_s15 }
   0x4   :  { %s173_s18 = scalar_lea.hbm %s320_s0, 128 }
   0x5   :  { %p174_p0 = scmp.ne.s32.totalorder %s320_s0, %s173_s18  ;;  %p177_p1 = scmp.lt.u32.totalorder %s173_s18, %s320_s0 }
   0x7   :  { %p179_p2 = pnand %p177_p1, %p174_p0 }
   0x9   :  { %182 = shalt.err (!%p179_p2)
}
   0xa   :  { %s183_s23 = scalar_lea.vmem %s18_s13, 128  ;;  %p188_p4 = scmp.lt.s32.totalorder %s18_s13, %s18_s13 }
   0xb   :  { %p184_p3 = scmp.ne.s32.totalorder %s18_s13, %s183_s23  ;;  %p189_p5 = scmp.lt.s32.totalorder %s183_s23, %s183_s23 }
   0xd   :  { %p190_p6 = por %p189_p5, %p188_p4 }
   0xf   :  { %p191_p7 = pnand %p190_p6, %p184_p3 }
  0x11   :  { %194 = shalt.err (!%p191_p7)
}
  0x12   :  { %20 = dma.hbm_to_vmem [thread:$0]  %s320_s0, 128, %s18_s13, [#allocation3]  }
  0x13   :  { %s195_s28 = scalar_lea.hbm %s321_s1, 256 }
  0x14   :  { %p196_p8 = scmp.ne.s32.totalorder %s321_s1, %s195_s28  ;;  %p199_p9 = scmp.lt.u32.totalorder %s195_s28, %s321_s1 }
  0x16   :  { %p201_p10 = pnand %p199_p9, %p196_p8 }
  0x18   :  { %204 = shalt.err (!%p201_p10)
}
  0x19   :  { %s205_s6 = scalar_lea.vmem %s274_s15, 256  ;;  %p210_p12 = scmp.lt.s32.totalorder %s274_s15, %s274_s15 }
  0x1a   :  { %p206_p11 = scmp.ne.s32.totalorder %s274_s15, %s205_s6  ;;  %p211_p13 = scmp.lt.s32.totalorder %s205_s6, %s205_s6 }
  0x1c   :  { %p212_p0 = por %p211_p13, %p210_p12 }
  0x1e   :  { %p213_p1 = pnand %p212_p0, %p206_p11 }
  0x20   :  { %216 = shalt.err (!%p213_p1)
}
  0x21   :  { %s247_s0 = smov 128   ;;  %s248_s7 = smov 8  }
  0x22   :  { %32 = dma.hbm_to_vmem [thread:$0]  %s321_s1, 256, %s274_s15, [#allocation6], %s247_s0, %s247_s0, %s248_s7  }
  0x23   :  { %239 = dma.done.wait [#allocation3], 128  }
  0x24   :  { %240 = vsyncadd [#allocation3], 4294967168 }
  0x25   :  { %241 = dma.done.wait [#allocation6], 256  }
  0x26   :  { %242 = vsyncadd [#allocation6], 4294967040  ;;  %v249_v0 = vmov 0.0|0.0   ;;  %vm250_vm0 = vmmov 0   ;;  %v251_v1 = vmov 0.0   ;;  %vm55_vm1 = vcmask 1043456  }
  0x27   :  { %160 = vmatprep.subr.bf16.mxu0 %v249_v0  ;;  %157 = vmatprep.mubr.msk.f32.mxu0 %vm250_vm0, %v251_v1  ;;  %v42_v2 = vld [vmem:[#allocation5] sm:$0xff]  ;;  %v43_v3 = vld [vmem:[#allocation5 + $0x8] sm:$0xf]  ;;  %vm252_vm2 = vmmov 1   ;;  %v41_v5 = vld [vmem:[#allocation2] sm:$0xff]  ;;  %vm51_vm4 = vcmask 97280  }
  0x28   :  { %vm162_vm3 = vmpackc.low %vm55_vm1, %vm252_vm2  ;;  %v161_v4 = vpack.c.bf16 %v43_v3, %v42_v2  ;;  %v147_v6 = vld [vmem:[%s322_s2] ss:$0 sm:$0xff]  ;;  %s253_s11 = smov [#allocation7]  }
  0x29   :  { %s137_s12 = sshll.u32 %s253_s11, 4  ;;  %s138_s12 = int_to_ptr.vmem [resolvable:$true] %s137_s12 }
  0x2a   :  { %163 = vmatpush3.bf16.msk.msra.mxu0 %vm162_vm3, %v161_v4  ;;  %s217_s13 = scalar_lea.vmem %s138_s12, 128  ;;  %p222_p3 = scmp.lt.s32.totalorder %s138_s12, %s138_s12 }
  0x2b   :  { %p218_p2 = scmp.ne.s32.totalorder %s138_s12, %s217_s13  ;;  %p223_p4 = scmp.lt.s32.totalorder %s217_s13, %s217_s13 }
  0x2d   :  { %158 = vmatmul.mubr.msk.f32.vlgmr.msra.gmra.mrb[0].mxu0 %vm51_vm4, %v41_v5  ;;  %p224_p5 = por %p223_p4, %p222_p3 }
  0x2f   :  { %p225_p6 = pnand %p224_p5, %p218_p2 }
 0x100   :  { %v125_v7 = vpop.f32.mrb[0].mxu0 }
 0x101   :  { %v126_v8 = vadd.f32 %v147_v6, %v125_v7  ;;  %v159_v9 = vpop.f32.mrb[1].mxu0 }
 0x103   :  { %v129_v10 = vmax.f32 %v126_v8, 0.0 }
 0x105   :  { %130 = vst [vmem:[#allocation7] sm:$0xff] %v129_v10 }
 0x106   :  { %228 = shalt.err (!%p225_p6)
}
 0x107   :  { %s229_s16 = scalar_lea.hbm %s323_s3, 128 }
 0x108   :  { %p230_p7 = scmp.ne.s32.totalorder %s323_s3, %s229_s16  ;;  %p233_p8 = scmp.lt.u32.totalorder %s229_s16, %s323_s3 }
 0x10a   :  { %p235_p9 = pnand %p233_p8, %p230_p7 }
 0x10c   :  { %238 = shalt.err (!%p235_p9)
}
 0x10d   :  { %140 = dma.vmem_to_hbm [thread:$0]  %s138_s12, 128, %s323_s3, [#allocation4]  }
 0x10e   :  { %243 = dma.done.wait [#allocation4], 128  }
 0x10f   :  { %244 = vsyncadd [#allocation4], 4294967168 }
 0x110   :  { %144 = vsyncpa [#allocation3], 1 }
 0x111   :  { %145 = vsyncpa [#allocation6], 1 }
 0x112   :  { %146 = vsyncpa [#allocation4], 1 }

</bundles_post_ra>
